<compile_context>
chip_gen: v7x
topology: tpu7x:2x2x1
jax: 0.10.0
libtpu: 0.0.40
codegen_flags: <defaults>
</compile_context>

<pallas_src>
import math
import numpy as np
import jax
import jax.numpy as jnp
from jax.experimental import pallas as pl
from jax.experimental.pallas import tpu as pltpu


# ------------------------- noise schedule (glue, numpy) -------------------------
def make_beta_schedule_linear(n_timestep, linear_start, linear_end):
    return np.linspace(linear_start, linear_end, n_timestep, dtype=np.float64)


TRAIN_SCHED = dict(n_timestep=2000, linear_start=1e-06, linear_end=0.01)


# ------------------------------- Pallas kernel ----------------------------------
def diffguard_kernel(sqrt_g_ref, sqrt_1mg_ref,            # SMEM (B,)
                     x0_ref, xc_ref, nz_ref,              # VMEM (B, C, HW)
                     w1_ref,                              # VMEM (hidden, 2C)
                     bias1_ref,                           # VMEM (B, hidden, 1)
                     w2_ref,                              # VMEM (C, hidden)
                     b2_ref,                              # VMEM (C, 1)
                     out_ref):                            # VMEM (B, C, HW)
    B = x0_ref.shape[0]
    for b in range(B):                        # static, unrolled at trace time
        sg = sqrt_g_ref[b]
        s1 = sqrt_1mg_ref[b]

        # q-sample: x_noisy = sqrt(gamma) * x_0 + sqrt(1 - gamma) * noise
        x_noisy = sg * x0_ref[b] + s1 * nz_ref[b]                       # (C, HW)

        # denoise_fn(concat((x_cond, x_noisy), channel), gamma):
        # single K=2C contraction on the MXU, HW on the lane axis.
        cat = jnp.concatenate([xc_ref[b], x_noisy], axis=0)             # (2C, HW)
        h = jnp.dot(w1_ref[...], cat, preferred_element_type=jnp.float32)
        h = jnp.maximum(h + bias1_ref[b], 0.0)                          # (hidden, HW)

        out = jnp.dot(w2_ref[...], h,
                      preferred_element_type=jnp.float32) + b2_ref[...]  # (C, HW)
        out_ref[b] = out.astype(out_ref.dtype)


# --------------------------------- wrapper ---------------------------------------
def diffguard_forward(x_0, x_cond, params, key):
    """Mirrors DiffGuard.forward(x_0, x_cond=x_cond) with restoration=False, y=None,
    mask=None. Returns (noise, noise_hat), both NCHW."""
    B, C, H, W = x_0.shape
    HW = H * W
    hidden = params["w1"].shape[0]

    # set_new_noise_schedule(phase='train')
    betas = make_beta_schedule_linear(**TRAIN_SCHED)
    gammas_np = np.cumprod(1.0 - betas, axis=0).astype(np.float32)
    gammas = jnp.asarray(gammas_np)
    num_timesteps = int(betas.shape[0])

    k_t, k_u, k_n = jax.random.split(key, 3)
    # t ~ randint(1, num_timesteps)
    t = jax.random.randint(k_t, (B,), 1, num_timesteps)
    gamma_t1 = gammas[t - 1]
    gamma_t2 = gammas[t]
    u = jax.random.uniform(k_u, (B,), dtype=jnp.float32)
    sample_gammas = (gamma_t2 - gamma_t1) * u + gamma_t1               # (B,)
    noise = jax.random.normal(k_n, x_0.shape, dtype=x_0.dtype)

    # Hoisted per-batch scalar math (fuses into surrounding XLA for free).
    sqrt_g = jnp.sqrt(sample_gammas).astype(jnp.float32)               # (B,)
    sqrt_1mg = jnp.sqrt(jnp.maximum(1.0 - sample_gammas, 0.0)).astype(jnp.float32)
    bias1 = (params["b1"][None, :]
             + sample_gammas[:, None] * params["wg"][None, :])         # (B, hidden)
    bias1 = bias1.reshape(B, hidden, 1).astype(jnp.float32)

    # NCHW kept; just flatten spatial so HW is the (lane-dense) last dim.
    x0f = x_0.reshape(B, C, HW)
    xcf = x_cond.reshape(B, C, HW)
    nzf = noise.reshape(B, C, HW)

    smem = pl.BlockSpec(memory_space=pltpu.MemorySpace.SMEM)
    vmem = pl.BlockSpec(memory_space=pltpu.MemorySpace.VMEM)

    out_f = pl.pallas_call(
        diffguard_kernel,
        out_shape=jax.ShapeDtypeStruct((B, C, HW), x_0.dtype),
        in_specs=[smem, smem,            # sqrt(gamma), sqrt(1-gamma)
                  vmem, vmem, vmem,      # x_0, x_cond, noise
                  vmem, vmem, vmem, vmem],   # w1, bias1, w2, b2
        out_specs=vmem,
    )(sqrt_g, sqrt_1mg, x0f, xcf, nzf,
      params["w1"], bias1, params["w2"], params["b2"])

    noise_hat = out_f.reshape(B, C, H, W)
    return noise, noise_hat


# ------------------------ deterministic parameter init ---------------------------
def init_params(noise_channel, hidden, key):
    k1, k2, k3 = jax.random.split(key, 3)
    s1 = 1.0 / math.sqrt(2.0 * noise_channel)
    s2 = 1.0 / math.sqrt(hidden)
    return {
        # first 1x1 conv acting on concat([x_cond, x_noisy]) -> fused (hidden, 2C)
        "w1": jax.random.normal(k1, (hidden, 2 * noise_channel), jnp.float32) * s1,
        "b1": jnp.zeros((hidden,), jnp.float32),
        "wg": jax.random.normal(k2, (hidden,), jnp.float32),   # noise-level conditioning
        "w2": jax.random.normal(k3, (noise_channel, hidden), jnp.float32) * s2,
        "b2": jnp.zeros((noise_channel, 1), jnp.float32),
    }


if __name__ == "__main__":
    key = jax.random.PRNGKey(0)
    kx, kc, kp, kf = jax.random.split(key, 4)

    B, C, H, W = 2, 4, 16, 16       # batch, noise_channel, input_h, input_w
    HIDDEN = 32

    x_0 = jax.random.normal(kx, (B, C, H, W), dtype=jnp.float32)
    x_cond = jax.random.normal(kc, (B, C, H, W), dtype=jnp.float32)
    params = init_params(C, HIDDEN, kp)

    noise, noise_hat = diffguard_forward(x_0, x_cond, params, kf)
    jax.block_until_ready((noise, noise_hat))

    assert noise.shape == (B, C, H, W)
    assert noise_hat.shape == (B, C, H, W)
    assert noise_hat.dtype == x_0.dtype
    assert bool(jnp.all(jnp.isfinite(noise_hat)))
    print("KERNEL_OK")
</pallas_src>

<mosaic_0001>
module attributes {stable_mosaic.version = 11 : i64} {
  func.func @diffguard_kernel(%arg0: memref<2xf32, #tpu.memory_space<smem>>, %arg1: memref<2xf32, #tpu.memory_space<smem>>, %arg2: memref<2x4x256xf32, #tpu.memory_space<vmem>>, %arg3: memref<2x4x256xf32, #tpu.memory_space<vmem>>, %arg4: memref<2x4x256xf32, #tpu.memory_space<vmem>>, %arg5: memref<32x8xf32, #tpu.memory_space<vmem>>, %arg6: memref<2x32x1xf32, #tpu.memory_space<vmem>>, %arg7: memref<4x32xf32, #tpu.memory_space<vmem>>, %arg8: memref<4x1xf32, #tpu.memory_space<vmem>>, %arg9: memref<2x4x256xf32, #tpu.memory_space<vmem>>) attributes {dimension_semantics = [], scalar_prefetch = 0 : i64, scratch_operands = 0 : i64, tpu.core_type = #tpu.core_type<tc>} {
    %c0 = arith.constant 0 : index
    %0 = memref.load %arg0[%c0] : memref<2xf32, #tpu.memory_space<smem>>
    %c0_0 = arith.constant 0 : index
    %1 = memref.load %arg1[%c0_0] : memref<2xf32, #tpu.memory_space<smem>>
    %c0_1 = arith.constant 0 : index
    %c0_2 = arith.constant 0 : index
    %c0_3 = arith.constant 0 : index
    %2 = vector.load %arg2[%c0_1, %c0_2, %c0_3] : memref<2x4x256xf32, #tpu.memory_space<vmem>>, vector<1x4x256xf32>
    %3 = vector.shape_cast %2 : vector<1x4x256xf32> to vector<4x256xf32>
    %4 = vector.broadcast %0 : f32 to vector<4x256xf32>
    %5 = arith.mulf %4, %3 : vector<4x256xf32>
    %c0_4 = arith.constant 0 : index
    %c0_5 = arith.constant 0 : index
    %c0_6 = arith.constant 0 : index
    %6 = vector.load %arg4[%c0_4, %c0_5, %c0_6] : memref<2x4x256xf32, #tpu.memory_space<vmem>>, vector<1x4x256xf32>
    %7 = vector.shape_cast %6 : vector<1x4x256xf32> to vector<4x256xf32>
    %8 = vector.broadcast %1 : f32 to vector<4x256xf32>
    %9 = arith.mulf %8, %7 : vector<4x256xf32>
    %10 = arith.addf %5, %9 : vector<4x256xf32>
    %c0_7 = arith.constant 0 : index
    %c0_8 = arith.constant 0 : index
    %c0_9 = arith.constant 0 : index
    %11 = vector.load %arg3[%c0_7, %c0_8, %c0_9] : memref<2x4x256xf32, #tpu.memory_space<vmem>>, vector<1x4x256xf32>
    %12 = vector.shape_cast %11 : vector<1x4x256xf32> to vector<4x256xf32>
    %13 = tpu.concatenate %12, %10 in 0 : vector<4x256xf32>, vector<4x256xf32> -> vector<8x256xf32>
    %c0_10 = arith.constant 0 : index
    %c0_11 = arith.constant 0 : index
    %14 = vector.load %arg5[%c0_10, %c0_11] : memref<32x8xf32, #tpu.memory_space<vmem>>, vector<32x8xf32>
    %cst = arith.constant dense<0.000000e+00> : vector<32x256xf32>
    %15 = tpu.matmul %14, %13, %cst {dimension_numbers = #tpu.dot_dimension_numbers<[1], [0], [0], [1], [0, 0, 1, 1], [], []>} : vector<32x8xf32>, vector<8x256xf32>, vector<32x256xf32> -> vector<32x256xf32>
    %c0_12 = arith.constant 0 : index
    %c0_13 = arith.constant 0 : index
    %c0_14 = arith.constant 0 : index
    %16 = vector.load %arg6[%c0_12, %c0_13, %c0_14] : memref<2x32x1xf32, #tpu.memory_space<vmem>>, vector<1x32x1xf32>
    %17 = vector.shape_cast %16 : vector<1x32x1xf32> to vector<32x1xf32>
    %18 = vector.broadcast %17 : vector<32x1xf32> to vector<32x256xf32>
    %19 = arith.addf %15, %18 : vector<32x256xf32>
    %cst_15 = arith.constant 0.000000e+00 : f32
    %20 = vector.broadcast %cst_15 : f32 to vector<32x256xf32>
    %21 = arith.maximumf %19, %20 : vector<32x256xf32>
    %c0_16 = arith.constant 0 : index
    %c0_17 = arith.constant 0 : index
    %22 = vector.load %arg7[%c0_16, %c0_17] : memref<4x32xf32, #tpu.memory_space<vmem>>, vector<4x32xf32>
    %cst_18 = arith.constant dense<0.000000e+00> : vector<4x256xf32>
    %23 = tpu.matmul %22, %21, %cst_18 {dimension_numbers = #tpu.dot_dimension_numbers<[1], [0], [0], [1], [0, 0, 1, 1], [], []>} : vector<4x32xf32>, vector<32x256xf32>, vector<4x256xf32> -> vector<4x256xf32>
    %c0_19 = arith.constant 0 : index
    %c0_20 = arith.constant 0 : index
    %24 = vector.load %arg8[%c0_19, %c0_20] : memref<4x1xf32, #tpu.memory_space<vmem>>, vector<4x1xf32>
    %25 = vector.broadcast %24 : vector<4x1xf32> to vector<4x256xf32>
    %26 = arith.addf %23, %25 : vector<4x256xf32>
    %c0_21 = arith.constant 0 : index
    %c0_22 = arith.constant 0 : index
    %c0_23 = arith.constant 0 : index
    %27 = vector.load %arg9[%c0_21, %c0_22, %c0_23] : memref<2x4x256xf32, #tpu.memory_space<vmem>>, vector<1x4x256xf32>
    %28 = vector.shape_cast %27 : vector<1x4x256xf32> to vector<4x256xf32>
    %29 = vector.shape_cast %26 : vector<4x256xf32> to vector<1x4x256xf32>
    tpu.vector_store %arg9[%c0_21, %c0_22, %c0_23], %29 {strides = array<i32>} : memref<2x4x256xf32, #tpu.memory_space<vmem>>, vector<1x4x256xf32>,
    %c1 = arith.constant 1 : index
    %30 = memref.load %arg0[%c1] : memref<2xf32, #tpu.memory_space<smem>>
    %c1_24 = arith.constant 1 : index
    %31 = memref.load %arg1[%c1_24] : memref<2xf32, #tpu.memory_space<smem>>
    %c1_25 = arith.constant 1 : index
    %c0_26 = arith.constant 0 : index
    %c0_27 = arith.constant 0 : index
    %32 = vector.load %arg2[%c1_25, %c0_26, %c0_27] : memref<2x4x256xf32, #tpu.memory_space<vmem>>, vector<1x4x256xf32>
    %33 = vector.shape_cast %32 : vector<1x4x256xf32> to vector<4x256xf32>
    %34 = vector.broadcast %30 : f32 to vector<4x256xf32>
    %35 = arith.mulf %34, %33 : vector<4x256xf32>
    %c1_28 = arith.constant 1 : index
    %c0_29 = arith.constant 0 : index
    %c0_30 = arith.constant 0 : index
    %36 = vector.load %arg4[%c1_28, %c0_29, %c0_30] : memref<2x4x256xf32, #tpu.memory_space<vmem>>, vector<1x4x256xf32>
    %37 = vector.shape_cast %36 : vector<1x4x256xf32> to vector<4x256xf32>
    %38 = vector.broadcast %31 : f32 to vector<4x256xf32>
    %39 = arith.mulf %38, %37 : vector<4x256xf32>
    %40 = arith.addf %35, %39 : vector<4x256xf32>
    %c1_31 = arith.constant 1 : index
    %c0_32 = arith.constant 0 : index
    %c0_33 = arith.constant 0 : index
    %41 = vector.load %arg3[%c1_31, %c0_32, %c0_33] : memref<2x4x256xf32, #tpu.memory_space<vmem>>, vector<1x4x256xf32>
    %42 = vector.shape_cast %41 : vector<1x4x256xf32> to vector<4x256xf32>
    %43 = tpu.concatenate %42, %40 in 0 : vector<4x256xf32>, vector<4x256xf32> -> vector<8x256xf32>
    %c0_34 = arith.constant 0 : index
    %c0_35 = arith.constant 0 : index
    %44 = vector.load %arg5[%c0_34, %c0_35] : memref<32x8xf32, #tpu.memory_space<vmem>>, vector<32x8xf32>
    %cst_36 = arith.constant dense<0.000000e+00> : vector<32x256xf32>
    %45 = tpu.matmul %44, %43, %cst_36 {dimension_numbers = #tpu.dot_dimension_numbers<[1], [0], [0], [1], [0, 0, 1, 1], [], []>} : vector<32x8xf32>, vector<8x256xf32>, vector<32x256xf32> -> vector<32x256xf32>
    %c1_37 = arith.constant 1 : index
    %c0_38 = arith.constant 0 : index
    %c0_39 = arith.constant 0 : index
    %46 = vector.load %arg6[%c1_37, %c0_38, %c0_39] : memref<2x32x1xf32, #tpu.memory_space<vmem>>, vector<1x32x1xf32>
    %47 = vector.shape_cast %46 : vector<1x32x1xf32> to vector<32x1xf32>
    %48 = vector.broadcast %47 : vector<32x1xf32> to vector<32x256xf32>
    %49 = arith.addf %45, %48 : vector<32x256xf32>
    %cst_40 = arith.constant 0.000000e+00 : f32
    %50 = vector.broadcast %cst_40 : f32 to vector<32x256xf32>
    %51 = arith.maximumf %49, %50 : vector<32x256xf32>
    %c0_41 = arith.constant 0 : index
    %c0_42 = arith.constant 0 : index
    %52 = vector.load %arg7[%c0_41, %c0_42] : memref<4x32xf32, #tpu.memory_space<vmem>>, vector<4x32xf32>
    %cst_43 = arith.constant dense<0.000000e+00> : vector<4x256xf32>
    %53 = tpu.matmul %52, %51, %cst_43 {dimension_numbers = #tpu.dot_dimension_numbers<[1], [0], [0], [1], [0, 0, 1, 1], [], []>} : vector<4x32xf32>, vector<32x256xf32>, vector<4x256xf32> -> vector<4x256xf32>
    %c0_44 = arith.constant 0 : index
    %c0_45 = arith.constant 0 : index
    %54 = vector.load %arg8[%c0_44, %c0_45] : memref<4x1xf32, #tpu.memory_space<vmem>>, vector<4x1xf32>
    %55 = vector.broadcast %54 : vector<4x1xf32> to vector<4x256xf32>
    %56 = arith.addf %53, %55 : vector<4x256xf32>
    %c1_46 = arith.constant 1 : index
    %c0_47 = arith.constant 0 : index
    %c0_48 = arith.constant 0 : index
    %57 = vector.load %arg9[%c1_46, %c0_47, %c0_48] : memref<2x4x256xf32, #tpu.memory_space<vmem>>, vector<1x4x256xf32>
    %58 = vector.shape_cast %57 : vector<1x4x256xf32> to vector<4x256xf32>
    %59 = vector.shape_cast %56 : vector<4x256xf32> to vector<1x4x256xf32>
    tpu.vector_store %arg9[%c1_46, %c0_47, %c0_48], %59 {strides = array<i32>} : memref<2x4x256xf32, #tpu.memory_space<vmem>>, vector<1x4x256xf32>,
    return
  }
}

</mosaic_0001>

<bundles_post_ra>
// kernel: tpu_custom_call.1
= control target key start
LH: loop header
LB: loop body
LE: loop exit
PB: predicated region body
PF: predicated region fallthrough
CT: control target
= control target key end

     0   :  { %14 = vsyncpa [#allocation4], 0  ;;  %s845_s0 = inlined_call_operand.vmem [shape: f32[2], index: 0, kind: input, shape index: {}]   ;;  %s846_s1 = inlined_call_operand.vmem [shape: f32[2], index: 1, kind: input, shape index: {}]   ;;  %s847_s2 = inlined_call_operand.vmem [shape: f32[2,4,256], index: 2, kind: input, shape index: {}]   ;;  %s848_s3 = inlined_call_operand.vmem [shape: f32[2,4,256], index: 3, kind: input, shape index: {}]   ;;  %s849_s4 = inlined_call_operand.vmem [shape: f32[2,4,256], index: 4, kind: input, shape index: {}]   ;;  %s850_s5 = inlined_call_operand.vmem [shape: f32[32,8], index: 5, kind: input, shape index: {}]   ;;  %s851_s6 = inlined_call_operand.vmem [shape: f32[2,32,1], index: 6, kind: input, shape index: {}]   ;;  %s852_s7 = inlined_call_operand.vmem [shape: f32[4,32], index: 7, kind: input, shape index: {}]   ;;  %s853_s8 = inlined_call_operand.vmem [shape: f32[4,1], index: 8, kind: input, shape index: {}]   ;;  %s854_s9 = inlined_call_operand.hbm [shape: f32[2,4,256], index: 9, kind: output, shape index: {}]  }
   0x1   :  { %15 = vsyncpa [#allocation6], 0 }
   0x2   :  { %16 = vsyncpa [#allocation3], 0  ;;  %s23_s11 = sshll.u32 %s845_s0, 4  ;;  %s33_s14 = sshll.u32 %s846_s1, 4  ;;  %s24_s11 = int_to_ptr.vmem [resolvable:$true] %s23_s11  ;;  %s34_s14 = int_to_ptr.vmem [resolvable:$true] %s33_s14 }
   0x3   :  { %s612_s15 = scalar_lea.vmem %s24_s11, 16  ;;  %p617_p1 = scmp.lt.s32.totalorder %s24_s11, %s24_s11 }
   0x4   :  { %p613_p0 = scmp.ne.s32.totalorder %s24_s11, %s612_s15  ;;  %p618_p2 = scmp.lt.s32.totalorder %s612_s15, %s612_s15 }
   0x6   :  { %p619_p3 = por %p618_p2, %p617_p1 }
   0x8   :  { %p620_p4 = pnand %p619_p3, %p613_p0 }
   0xa   :  { %623 = shalt.err (!%p620_p4)
}
   0xb   :  { %s664_s16 = smov [#allocation2]   ;;  %s624_s17 = scalar_lea.vmem %s34_s14, 16 }
   0xc   :  { %26 = dma.vmem_to_smem %s24_s11, 16, %s664_s16, [#allocation4]  }
   0xd   :  { %p625_p5 = scmp.ne.s32.totalorder %s34_s14, %s624_s17  ;;  %p629_p6 = scmp.lt.s32.totalorder %s34_s14, %s34_s14 }
   0xe   :  { %p630_p7 = scmp.lt.s32.totalorder %s624_s17, %s624_s17 }
  0x10   :  { %p631_p8 = por %p630_p7, %p629_p6 }
  0x12   :  { %p632_p9 = pnand %p631_p8, %p625_p5 }
  0x14   :  { %635 = shalt.err (!%p632_p9)
}
  0x15   :  { %s665_s0 = smov [#allocation5]  }
  0x16   :  { %36 = dma.vmem_to_smem %s34_s14, 16, %s665_s0, [#allocation6]  }
  0x17   :  { %658 = dma.done.wait [#allocation4], 16  }
  0x18   :  { %659 = vsyncadd [#allocation4], 4294967280 }
  0x19   :  { %660 = dma.done.wait [#allocation6], 16  }
  0x1a   :  { %661 = vsyncadd [#allocation6], 4294967280 }
  0x1b   :  { %57 = sfence }
  0x1c   :  { %s58_s1 = sld [smem:[#allocation2]]  ;;  %v666_v0 = vmov 0.0   ;;  %v81_v1 = vld [vmem:[%s851_s6] sm:$0xff]  ;;  %v667_v2 = vmov 0   ;;  %v83_v3 = vld [vmem:[%s851_s6 + $0x10] sm:$0xff]  ;;  %v82_v7 = vld [vmem:[%s851_s6 + $0x8] sm:$0xff] }
  0x1d   :  { %s59_s18 = sld [smem:[#allocation5]]  ;;  %182 = vmatprep.mubr.f32.mxu0 %v666_v0  ;;  %290 = vmatprep.mubr.f32.mxu1 %v666_v0  ;;  %v60_v4 = vld [vmem:[%s847_s2] sm:$0xff]  ;;  %v84_v8 = vld [vmem:[%s851_s6 + $0x18] sm:$0xff]  ;;  %vm74_vm0 = vcmask 1043456   ;;  %v577_v16 = vld [vmem:[%s851_s6 + $0x28] sm:$0xff]  ;;  %vm105_vm1 = vcmask 64512  }
  0x1e   :  { %608 = vset.pattern.permute.xlu0 %v667_v2  ;;  %609 = vset.pattern.permute.xlu1 %v667_v2  ;;  %v63_v5 = vld [vmem:[%s849_s4] sm:$0xff]  ;;  %v578_v21 = vld [vmem:[%s851_s6 + $0x30] sm:$0xff]  ;;  %v579_v22 = vld [vmem:[%s851_s6 + $0x38] sm:$0xff]  ;;  %s572_s29 = sld [smem:[#allocation5 + $0x1]]  ;;  %vm222_vm2 = vcmask 261120   ;;  %s668_s15 = smov [#allocation7]  }
  0x1f   :  { %v67_v6 = vld [vmem:[%s848_s3] sm:$0xff]  ;;  %87 = vperm.xlu0 %608, %v81_v1   ;;  %97 = vperm.xlu1 %609, %v83_v3   ;;  %v775_v23 = vld [vmem:[%s850_s5 + $0x8] sm:$0xff]  ;;  %v789_v26 = vld [vmem:[%s850_s5 + $0x10] sm:$0xff]  ;;  %s553_s16 = sshll.u32 %s668_s15, 4  ;;  %s554_s16 = int_to_ptr.vmem [resolvable:$true] %s553_s16 }
  0x20   :  { %v69_v13 = vcombine.high %v67_v6, %v67_v6  ;;  %v576_v15 = vld [vmem:[%s851_s6 + $0x20] sm:$0xff]  ;;  %v797_v27 = vld [vmem:[%s850_s5 + $0x18] sm:$0xff]  ;;  %v573_v41 = vld [vmem:[%s847_s2 + $0x8] sm:$0xff]  ;;  %s636_s17 = scalar_lea.vmem %s554_s16, 256  ;;  %p641_p11 = scmp.lt.s32.totalorder %s554_s16, %s554_s16 }
  0x21   :  { %v760_v19 = vld [vmem:[%s850_s5] sm:$0xff]  ;;  %v574_v43 = vld [vmem:[%s849_s4 + $0x8] sm:$0xff]  ;;  %p637_p10 = scmp.ne.s32.totalorder %s554_s16, %s636_s17  ;;  %p642_p12 = scmp.lt.s32.totalorder %s636_s17, %s636_s17 }
  0x22   :  { %v61_v9 = vstv %s58_s1  ;;  %v216_v24 = vld [vmem:[%s853_s8] sm:$0xf]  ;;  %v575_v57 = vld [vmem:[%s848_s3 + $0x8] sm:$0xff] }
  0x23   :  { %v64_v10 = vstv %s59_s18  ;;  %v62_v11 = vmul.f32 %v61_v9, %v60_v4  ;;  %92 = vperm.xlu0 %608, %v82_v7   ;;  %102 = vperm.xlu1 %609, %v84_v8   ;;  %v462_v25 = vld [vmem:[%s853_s8] sm:$0xf]  ;;  %s571_s8 = sld [smem:[#allocation2 + $0x1]]  ;;  %v316_v1 = vcombine.high %v575_v57, %v575_v57  ;;  %p643_p13 = por %p642_p12, %p641_p11 }
  0x24   :  { %v65_v12 = vmul.f32 %v64_v10, %v63_v5  ;;  %v310_v44 = vstv %s572_s29  ;;  %v215_v8 = vld [vmem:[%s852_s7] sm:$0xf] }
  0x25   :  { %v311_v52 = vmul.f32 %v574_v43, %v310_v44  ;;  %p644_p0 = pnand %p643_p13, %p637_p10 }
  0x26   :  { %v66_v14 = vadd.f32 %v65_v12, %v62_v11 }
  0x27   :  { %334 = vperm.xlu0 %608, %v576_v15   ;;  %339 = vperm.xlu1 %609, %v577_v16  }
  0x28   :  { %v76_v17 = vsel %vm74_vm0, %v69_v13, %v66_v14  ;;  %v72_v18 = vcombine.low %v66_v14, %v66_v14 }
  0x29   :  { %118 = vmatprep.subr.mxu0 %v76_v17  ;;  %v306_v42 = vstv %s571_s8 }
  0x2a   :  { %v75_v20 = vsel %vm74_vm0, %v67_v6, %v72_v18  ;;  %v307_v51 = vmul.f32 %v573_v41, %v306_v42 }
  0x2b   :  { %119 = vmatpush1.msra.mxu0 %v75_v20  ;;  %344 = vperm.xlu0 %608, %v578_v21  }
  0x2c   :  { %566 = vmatmul.mubr.msk.f32.vlgmr.msra.gmra.mrb[0].mxu0 %vm105_vm1, %v760_v19  ;;  %349 = vperm.xlu1 %609, %v579_v22   ;;  %v312_v61 = vadd.f32 %v311_v52, %v307_v51 }
  0x2d   :  { %188 = vmatprep.mubr.f32.mxu0 %v666_v0 }
  0x2e   :  { %v319_v6 = vcombine.low %v312_v61, %v312_v61  ;;  %v322_v7 = vsel %vm74_vm0, %v316_v1, %v312_v61 }
  0x2f   :  { %219 = vperm.xlu0 %608, %v216_v24  }
  0x30   :  { %567 = vmatmul.mubr.msk.f32.gmra.mrb[2].mxu0 %vm105_vm1, %v775_v23  ;;  %465 = vperm.xlu1 %609, %v462_v25   ;;  %v321_v9 = vsel %vm74_vm0, %v575_v57, %v319_v6 }
  0x31   :  { %194 = vmatprep.mubr.f32.mxu0 %v666_v0 }
  0x34   :  { %568 = vmatmul.mubr.msk.f32.gmra.mrb[4].mxu0 %vm105_vm1, %v789_v26 }
  0x35   :  { %200 = vmatprep.mubr.f32.mxu0 %v666_v0 }
  0x38   :  { %569 = vmatmul.mubr.msk.f32.gmra.mrb[6].mxu0 %vm105_vm1, %v797_v27 }
  0x39   :  { %535 = vmatprep.mubr.f32.mxu0 %v666_v0 }
  0x9e   :  { %v88_v28 = vpop.permute.xlu0 %87  ;;  %v98_v37 = vpop.permute.xlu1 %97 }
  0xa2   :  { %v93_v32 = vpop.permute.xlu0 %92  ;;  %v103_v54 = vpop.permute.xlu1 %102 }
  0xa6   :  { %v335_v10 = vpop.permute.xlu0 %334  ;;  %v340_v21 = vpop.permute.xlu1 %339 }
  0xaa   :  { %v345_v11 = vpop.permute.xlu0 %344 }
  0xae   :  { %v220_v12 = vpop.permute.xlu0 %219 }
  0xff   :  { %v184_v29 = vpop.f32.mrb[0].mxu0 }
 0x100   :  { %v186_v30 = vpop.f32.mrb[1].mxu0  ;;  %v185_v31 = vadd.f32 %v184_v29, %v88_v28 }
 0x101   :  { %v187_v33 = vadd.f32 %v186_v30, %v88_v28 }
 0x102   :  { %v207_v39 = vmax.f32 %v185_v31, 0.0 }
 0x103   :  { %v190_v34 = vpop.f32.mrb[2].mxu0  ;;  %v208_v45 = vmax.f32 %v187_v33, 0.0 }
 0x104   :  { %v191_v35 = vadd.f32 %v190_v34, %v93_v32  ;;  %v192_v36 = vpop.f32.mrb[3].mxu0 }
 0x105   :  { %v193_v38 = vadd.f32 %v192_v36, %v93_v32 }
 0x106   :  { %v209_v40 = vmax.f32 %v191_v35, 0.0  ;;  %v350_v35 = vpop.permute.xlu1 %349 }
 0x107   :  { %v210_v46 = vmax.f32 %v193_v38, 0.0  ;;  %v196_v47 = vpop.f32.mrb[4].mxu0 }
 0x108   :  { %v198_v48 = vpop.f32.mrb[5].mxu0  ;;  %v587_v49 = vpack.c.bf16 %v209_v40, %v207_v39  ;;  %v197_v53 = vadd.f32 %v196_v47, %v98_v37  ;;  %v461_v47 = vld [vmem:[%s852_s7] sm:$0xf] }
 0x109   :  { %v585_v50 = vpack.c.bf16 %v210_v46, %v208_v45  ;;  %v199_v55 = vadd.f32 %v198_v48, %v98_v37 }
 0x10a   :  { %v211_v62 = vmax.f32 %v197_v53, 0.0  ;;  %v466_v48 = vpop.permute.xlu1 %465 }
 0x10b   :  { %v202_v56 = vpop.f32.mrb[6].mxu0  ;;  %586 = vmatprep.subr.bf16.mxu1 %v585_v50  ;;  %v212_v2 = vmax.f32 %v199_v55, 0.0 }
 0x10c   :  { %v203_v58 = vadd.f32 %v202_v56, %v103_v54  ;;  %v204_v59 = vpop.f32.mrb[7].mxu0  ;;  %588 = vmatpush1.bf16.msra.mxu1 %v587_v49 }
 0x10d   :  { %v205_v60 = vadd.f32 %v204_v59, %v103_v54 }
 0x10e   :  { %v213_v63 = vmax.f32 %v203_v58, 0.0 }
 0x10f   :  { %v214_v3 = vmax.f32 %v205_v60, 0.0 }
 0x110   :  { %v591_v4 = vpack.c.bf16 %v213_v63, %v211_v62 }
 0x111   :  { %v589_v5 = vpack.c.bf16 %v214_v3, %v212_v2 }
 0x113   :  { %590 = vmatprep.subr.bf16.mxu1 %v589_v5 }
 0x114   :  { %592 = vmatpush1.bf16.msra.mxu1 %v591_v4 }
 0x115   :  { %364 = vmatprep.subr.mxu1 %v322_v7 }
 0x117   :  { %570 = vmatmul.mubr.msk.f32.vlgmr.msra.gmra.mrb[0].mxu1 %vm222_vm2, %v215_v8 }
 0x118   :  { %365 = vmatpush1.msra.mxu1 %v321_v9  ;;  %428 = vmatprep.mubr.f32.mxu1 %v666_v0 }
 0x11b   :  { %580 = vmatmul.mubr.msk.f32.vlgmr.msra.gmra.mrb[2].mxu1 %vm105_vm1, %v760_v19 }
 0x11c   :  { %434 = vmatprep.mubr.f32.mxu1 %v666_v0 }
 0x11f   :  { %581 = vmatmul.mubr.msk.f32.gmra.mrb[4].mxu1 %vm105_vm1, %v775_v23 }
 0x120   :  { %440 = vmatprep.mubr.f32.mxu1 %v666_v0 }
 0x123   :  { %582 = vmatmul.mubr.msk.f32.gmra.mrb[6].mxu1 %vm105_vm1, %v789_v26 }
 0x124   :  { %446 = vmatprep.mubr.f32.mxu1 %v666_v0 }
 0x127   :  { %583 = vmatmul.mubr.msk.f32.gmra.mrb[8].mxu1 %vm105_vm1, %v797_v27 }
 0x1ea   :  { %v292_v13 = vpop.f32.mrb[0].mxu1 }
 0x1eb   :  { %v293_v14 = vadd.f32 %v292_v13, %v220_v12  ;;  %v294_v15 = vpop.f32.mrb[1].mxu1 }
 0x1ec   :  { %v295_v16 = vadd.f32 %v294_v15, %v220_v12 }
 0x1ee   :  { %v299_v17 = vcombine.low %v293_v14, %v295_v16  ;;  %v430_v18 = vpop.f32.mrb[2].mxu1 }
 0x1ef   :  { %v432_v19 = vpop.f32.mrb[3].mxu1  ;;  %v431_v20 = vadd.f32 %v430_v18, %v335_v10 }
 0x1f0   :  { %301 = vst [vmem:[#allocation7] sm:$0xff] %v299_v17  ;;  %v433_v22 = vadd.f32 %v432_v19, %v335_v10 }
 0x1f1   :  { %v453_v26 = vmax.f32 %v431_v20, 0.0 }
 0x1f2   :  { %v436_v23 = vpop.f32.mrb[4].mxu1  ;;  %v454_v28 = vmax.f32 %v433_v22, 0.0 }
 0x1f3   :  { %v437_v24 = vadd.f32 %v436_v23, %v340_v21  ;;  %v438_v0 = vpop.f32.mrb[5].mxu1 }
 0x1f4   :  { %v439_v25 = vadd.f32 %v438_v0, %v340_v21 }
 0x1f5   :  { %v455_v27 = vmax.f32 %v437_v24, 0.0 }
 0x1f6   :  { %v456_v29 = vmax.f32 %v439_v25, 0.0  ;;  %v442_v30 = vpop.f32.mrb[6].mxu1 }
 0x1f7   :  { %v595_v31 = vpack.c.bf16 %v455_v27, %v453_v26  ;;  %v444_v32 = vpop.f32.mrb[7].mxu1  ;;  %v443_v34 = vadd.f32 %v442_v30, %v345_v11 }
 0x1f8   :  { %v593_v33 = vpack.c.bf16 %v456_v29, %v454_v28  ;;  %v445_v36 = vadd.f32 %v444_v32, %v345_v11 }
 0x1f9   :  { %v457_v41 = vmax.f32 %v443_v34, 0.0 }
 0x1fa   :  { %v448_v37 = vpop.f32.mrb[8].mxu1  ;;  %594 = vmatprep.subr.bf16.mxu0 %v593_v33  ;;  %v458_v43 = vmax.f32 %v445_v36, 0.0 }
 0x1fb   :  { %v449_v38 = vadd.f32 %v448_v37, %v350_v35  ;;  %v450_v39 = vpop.f32.mrb[9].mxu1  ;;  %596 = vmatpush1.bf16.msra.mxu0 %v595_v31 }
 0x1fc   :  { %v451_v40 = vadd.f32 %v450_v39, %v350_v35 }
 0x1fd   :  { %v459_v42 = vmax.f32 %v449_v38, 0.0 }
 0x1fe   :  { %v460_v44 = vmax.f32 %v451_v40, 0.0 }
 0x1ff   :  { %v599_v45 = vpack.c.bf16 %v459_v42, %v457_v41 }
 0x200   :  { %v597_v46 = vpack.c.bf16 %v460_v44, %v458_v43 }
 0x202   :  { %598 = vmatprep.subr.bf16.mxu0 %v597_v46 }
 0x203   :  { %600 = vmatpush1.bf16.msra.mxu0 %v599_v45 }
 0x206   :  { %584 = vmatmul.mubr.msk.f32.vlgmr.msra.gmra.mrb[8].mxu0 %vm222_vm2, %v461_v47 }
 0x2d9   :  { %v537_v49 = vpop.f32.mrb[8].mxu0 }
 0x2da   :  { %v538_v50 = vadd.f32 %v537_v49, %v466_v48  ;;  %v539_v51 = vpop.f32.mrb[9].mxu0 }
 0x2db   :  { %v540_v52 = vadd.f32 %v539_v51, %v466_v48 }
 0x2dd   :  { %v544_v53 = vcombine.low %v538_v50, %v540_v52 }
 0x2df   :  { %547 = vst [vmem:[#allocation7 + $0x8] sm:$0xff] %v544_v53 }
 0x2e0   :  { %647 = shalt.err (!%p644_p0)
}
 0x2e1   :  { %s648_s1 = scalar_lea.hbm %s854_s9, 256 }
 0x2e2   :  { %p649_p1 = scmp.ne.s32.totalorder %s854_s9, %s648_s1  ;;  %p652_p2 = scmp.lt.u32.totalorder %s648_s1, %s854_s9 }
 0x2e4   :  { %p654_p3 = pnand %p652_p2, %p649_p1 }
 0x2e6   :  { %657 = shalt.err (!%p654_p3)
}
 0x2e7   :  { %s669_s22 = smov 128   ;;  %s670_s23 = smov 8  }
 0x2e8   :  { %559 = dma.vmem_to_hbm [thread:$0]  %s554_s16, 256, %s854_s9, [#allocation3], %s669_s22, %s669_s22, %s670_s23  }
 0x2e9   :  { %662 = dma.done.wait [#allocation3], 256  }
 0x2ea   :  { %663 = vsyncadd [#allocation3], 4294967040 }
 0x2eb   :  { %563 = vsyncpa [#allocation3], 1 }
 0x2ec   :  { %564 = vsyncpa [#allocation4], 1 }
 0x2ed   :  { %565 = vsyncpa [#allocation6], 1 }

</bundles_post_ra>
